<compile_context>
chip_gen: v5e
topology: v5e:2x2
jax: 0.10.0
libtpu: 0.0.40
codegen_flags: <defaults>
</compile_context>

<pallas_src>
import jax
import jax.numpy as jnp
from jax.experimental import pallas as pl
from jax.experimental.pallas import tpu as pltpu

HIDDEN = 128
HEAD_PAD = 128  # lane-dense padded width for the fused (policy|value) head output


def a2c_kernel(x_ref, w1_ref, b1_ref, wh_ref, bh_ref, out_ref):
    # Hidden layer: Linear(state_dim -> 128) + ReLU (MXU matmul + VPU max).
    h = jnp.dot(x_ref[...], w1_ref[...], preferred_element_type=jnp.float32)
    h = jnp.maximum(h + b1_ref[...], 0.0)

    # Fused heads: Linear(128 -> action_dim + 1), zero-padded to 128 lanes so
    # the store is a single unmasked lane-dense vst.
    y = jnp.dot(h, wh_ref[...], preferred_element_type=jnp.float32)
    out_ref[...] = (y + bh_ref[...]).astype(out_ref.dtype)


def _pack_head(params, head_pad=HEAD_PAD):
    """Pack policy + value head weights/biases into one lane-dense matrix."""
    hidden = params["w1"].shape[1]
    action_dim = params["wp"].shape[1]
    wh = jnp.zeros((hidden, head_pad), jnp.float32)
    wh = wh.at[:, :action_dim].set(params["wp"])
    wh = wh.at[:, action_dim:action_dim + 1].set(params["wv"])
    bh = jnp.zeros((1, head_pad), jnp.float32)
    bh = bh.at[:, :action_dim].set(params["bp"])
    bh = bh.at[:, action_dim:action_dim + 1].set(params["bv"])
    return wh, bh


def a2c_forward(x, params, *, block_b=1024):
    """x: (B, state_dim) f32. params: dict of (in,out) weights and (1,out) biases."""
    B, state_dim = x.shape
    hidden = params["w1"].shape[1]
    action_dim = params["wp"].shape[1]

    wh, bh = _pack_head(params)

    # Batch tile: multiple of 8 sublanes, capped so double-buffered tiles stay
    # tiny relative to VMEM even on v7x (x tile + out tile << 16 MiB).
    tile_b = min(block_b, max(8, ((B + 7) // 8) * 8))
    pB = ((B + tile_b - 1) // tile_b) * tile_b
    if pB != B:
        x = jnp.pad(x, ((0, pB - B), (0, 0)))

    out = pl.pallas_call(
        a2c_kernel,
        out_shape=jax.ShapeDtypeStruct((pB, HEAD_PAD), jnp.float32),
        grid=(pB // tile_b,),
        in_specs=[
            pl.BlockSpec((tile_b, state_dim), lambda i: (i, 0)),   # x tile (pipelined)
            pl.BlockSpec((state_dim, hidden), lambda i: (0, 0)),   # W_fc  (resident)
            pl.BlockSpec((1, hidden), lambda i: (0, 0)),           # b_fc  (resident)
            pl.BlockSpec((hidden, HEAD_PAD), lambda i: (0, 0)),    # W_heads (resident)
            pl.BlockSpec((1, HEAD_PAD), lambda i: (0, 0)),         # b_heads (resident)
        ],
        out_specs=pl.BlockSpec((tile_b, HEAD_PAD), lambda i: (i, 0)),
        compiler_params=pltpu.CompilerParams(
            dimension_semantics=("parallel",),   # shard batch tiles across TCs (v7x)
        ),
    )(x, params["w1"], params["b1"], wh, bh)

    policy = out[:B, :action_dim]
    value = out[:B, action_dim:action_dim + 1]
    return policy, value


def init_params(key, state_dim, action_dim, hidden=HIDDEN):
    """Deterministic synthetic init (PyTorch-like uniform fan_in scaling).
    Weights stored as (in_features, out_features), i.e. transposed vs PyTorch."""
    ks = jax.random.split(key, 6)

    def lin(kw, kb, fan_in, fan_out):
        bound = 1.0 / jnp.sqrt(fan_in)
        w = jax.random.uniform(kw, (fan_in, fan_out), jnp.float32, -bound, bound)
        b = jax.random.uniform(kb, (1, fan_out), jnp.float32, -bound, bound)
        return w, b

    w1, b1 = lin(ks[0], ks[1], state_dim, hidden)
    wp, bp = lin(ks[2], ks[3], hidden, action_dim)
    wv, bv = lin(ks[4], ks[5], hidden, 1)
    return {"w1": w1, "b1": b1, "wp": wp, "bp": bp, "wv": wv, "bv": bv}


def a2c_reference(x, p):
    h = jnp.maximum(x @ p["w1"] + p["b1"], 0.0)
    return h @ p["wp"] + p["bp"], h @ p["wv"] + p["bv"]


if __name__ == "__main__":
    STATE_DIM = 4     # CartPole-v1 observation dim
    ACTION_DIM = 2    # CartPole-v1 action dim
    BATCH = 8         # small example batch; wrapper tiles/pipelines larger batches

    key = jax.random.PRNGKey(0)
    kx, kp = jax.random.split(key)
    x = jax.random.normal(kx, (BATCH, STATE_DIM), jnp.float32)
    params = init_params(kp, STATE_DIM, ACTION_DIM)

    policy, value = a2c_forward(x, params)
    jax.block_until_ready((policy, value))

    # correctness check vs. pure-JAX reference (f32 path -> tight tolerance)
    pol_ref, val_ref = a2c_reference(x, params)
    assert policy.shape == (BATCH, ACTION_DIM)
    assert value.shape == (BATCH, 1)
    assert jnp.allclose(policy, pol_ref, atol=1e-5, rtol=1e-5)
    assert jnp.allclose(value, val_ref, atol=1e-5, rtol=1e-5)

    print("KERNEL_OK")
</pallas_src>

<mosaic_0001>
module attributes {stable_mosaic.version = 11 : i64} {
  func.func @a2c_kernel(%arg0: i32, %arg1: memref<8x4xf32, #tpu.memory_space<vmem>>, %arg2: memref<4x128xf32, #tpu.memory_space<vmem>>, %arg3: memref<1x128xf32, #tpu.memory_space<vmem>>, %arg4: memref<128x128xf32, #tpu.memory_space<vmem>>, %arg5: memref<1x128xf32, #tpu.memory_space<vmem>>, %arg6: memref<8x128xf32, #tpu.memory_space<vmem>>) attributes {dimension_semantics = [#tpu.dimension_semantics<parallel>], iteration_bounds = array<i64: 1>, scalar_prefetch = 0 : i64, scratch_operands = 0 : i64, tpu.core_type = #tpu.core_type<tc>, window_params = [{transform_indices = @transform_0, window_bounds = array<i64: 8, 4>}, {pipeline_mode = #tpu.pipeline_mode<synchronous>, transform_indices = @transform_1, window_bounds = array<i64: 4, 128>}, {pipeline_mode = #tpu.pipeline_mode<synchronous>, transform_indices = @transform_2, window_bounds = array<i64: 1, 128>}, {pipeline_mode = #tpu.pipeline_mode<synchronous>, transform_indices = @transform_3, window_bounds = array<i64: 128, 128>}, {pipeline_mode = #tpu.pipeline_mode<synchronous>, transform_indices = @transform_4, window_bounds = array<i64: 1, 128>}, {transform_indices = @transform_5, window_bounds = array<i64: 8, 128>}]} {
    %c0 = arith.constant 0 : index
    %c0_0 = arith.constant 0 : index
    %0 = vector.load %arg1[%c0, %c0_0] : memref<8x4xf32, #tpu.memory_space<vmem>>, vector<8x4xf32>
    %c0_1 = arith.constant 0 : index
    %c0_2 = arith.constant 0 : index
    %1 = vector.load %arg2[%c0_1, %c0_2] : memref<4x128xf32, #tpu.memory_space<vmem>>, vector<4x128xf32>
    %cst = arith.constant dense<0.000000e+00> : vector<8x128xf32>
    %2 = tpu.matmul %0, %1, %cst {dimension_numbers = #tpu.dot_dimension_numbers<[1], [0], [0], [1], [0, 0, 1, 1], [], []>} : vector<8x4xf32>, vector<4x128xf32>, vector<8x128xf32> -> vector<8x128xf32>
    %c0_3 = arith.constant 0 : index
    %c0_4 = arith.constant 0 : index
    %3 = vector.load %arg3[%c0_3, %c0_4] : memref<1x128xf32, #tpu.memory_space<vmem>>, vector<1x128xf32>
    %4 = vector.broadcast %3 : vector<1x128xf32> to vector<8x128xf32>
    %5 = arith.addf %2, %4 : vector<8x128xf32>
    %cst_5 = arith.constant 0.000000e+00 : f32
    %6 = vector.broadcast %cst_5 : f32 to vector<8x128xf32>
    %7 = arith.maximumf %5, %6 : vector<8x128xf32>
    %c0_6 = arith.constant 0 : index
    %c0_7 = arith.constant 0 : index
    %8 = vector.load %arg4[%c0_6, %c0_7] : memref<128x128xf32, #tpu.memory_space<vmem>>, vector<128x128xf32>
    %cst_8 = arith.constant dense<0.000000e+00> : vector<8x128xf32>
    %9 = tpu.matmul %7, %8, %cst_8 {dimension_numbers = #tpu.dot_dimension_numbers<[1], [0], [0], [1], [0, 0, 1, 1], [], []>} : vector<8x128xf32>, vector<128x128xf32>, vector<8x128xf32> -> vector<8x128xf32>
    %c0_9 = arith.constant 0 : index
    %c0_10 = arith.constant 0 : index
    %10 = vector.load %arg5[%c0_9, %c0_10] : memref<1x128xf32, #tpu.memory_space<vmem>>, vector<1x128xf32>
    %11 = vector.broadcast %10 : vector<1x128xf32> to vector<8x128xf32>
    %12 = arith.addf %9, %11 : vector<8x128xf32>
    %c0_11 = arith.constant 0 : index
    %c0_12 = arith.constant 0 : index
    %13 = vector.load %arg6[%c0_11, %c0_12] : memref<8x128xf32, #tpu.memory_space<vmem>>, vector<8x128xf32>
    tpu.vector_store %arg6[%c0_11, %c0_12], %12 {strides = array<i32>} : memref<8x128xf32, #tpu.memory_space<vmem>>, vector<8x128xf32>,
    return
  }
  func.func @transform_0(%arg0: i32) -> (i32, i32) {
    %c0_i32 = arith.constant 0 : i32
    %c0_i32_0 = arith.constant 0 : i32
    return %arg0, %c0_i32 : i32, i32
  }
  func.func @transform_1(%arg0: i32) -> (i32, i32) {
    %c0_i32 = arith.constant 0 : i32
    %c0_i32_0 = arith.constant 0 : i32
    %c0_i32_1 = arith.constant 0 : i32
    return %c0_i32, %c0_i32_0 : i32, i32
  }
  func.func @transform_2(%arg0: i32) -> (i32, i32) {
    %c0_i32 = arith.constant 0 : i32
    %c0_i32_0 = arith.constant 0 : i32
    %c0_i32_1 = arith.constant 0 : i32
    return %c0_i32, %c0_i32_0 : i32, i32
  }
  func.func @transform_3(%arg0: i32) -> (i32, i32) {
    %c0_i32 = arith.constant 0 : i32
    %c0_i32_0 = arith.constant 0 : i32
    %c0_i32_1 = arith.constant 0 : i32
    return %c0_i32, %c0_i32_0 : i32, i32
  }
  func.func @transform_4(%arg0: i32) -> (i32, i32) {
    %c0_i32 = arith.constant 0 : i32
    %c0_i32_0 = arith.constant 0 : i32
    %c0_i32_1 = arith.constant 0 : i32
    return %c0_i32, %c0_i32_0 : i32, i32
  }
  func.func @transform_5(%arg0: i32) -> (i32, i32) {
    %c0_i32 = arith.constant 0 : i32
    %c0_i32_0 = arith.constant 0 : i32
    return %arg0, %c0_i32 : i32, i32
  }
}

</mosaic_0001>

<bundles_post_ra>
// kernel: tpu_custom_call.1
= control target key start
LH: loop header
LB: loop body
LE: loop exit
PB: predicated region body
PF: predicated region fallthrough
CT: control target
= control target key end

     0   :  { %10 = vsyncpa [#allocation3], 0  ;;  %s242_s0 = inlined_call_operand.vmem [shape: f32[8,4], index: 0, kind: input, shape index: {}]   ;;  %s243_s1 = inlined_call_operand.vmem [shape: f32[4,128], index: 1, kind: input, shape index: {}]   ;;  %s244_s2 = inlined_call_operand.vmem [shape: f32[1,128], index: 2, kind: input, shape index: {}]   ;;  %s245_s3 = inlined_call_operand.hbm [shape: f32[128,128], index: 3, kind: input, shape index: {}]   ;;  %s246_s4 = inlined_call_operand.vmem [shape: f32[1,128], index: 4, kind: input, shape index: {}]   ;;  %s247_s5 = inlined_call_operand.hbm [shape: f32[8,128], index: 5, kind: output, shape index: {}]  }
   0x1   :  { %11 = vsyncpa [#allocation4], 0  ;;  %s22_s20 = sshll.u32 %s245_s3, 4  ;;  %s190_s21 = smov [#allocation2]   ;;  %s23_s20 = int_to_ptr.hbm [resolvable:$true] %s22_s20 }
   0x2   :  { %s24_s22 = sshll.u32 %s190_s21, 4  ;;  %s191_s23 = smov 128   ;;  %s25_s22 = int_to_ptr.vmem [resolvable:$true] %s24_s22 }
   0x3   :  { %s192_s24 = smov 8  }
   0x4   :  { %30 = dma.hbm_to_vmem [thread:$0]  %s23_s20, 2048, %s25_s22, [#allocation3], %s191_s23, %s191_s23, %s192_s24  }
   0x5   :  { %186 = dma.done.wait [#allocation3], 2048  }
   0x6   :  { %187 = vsyncadd [#allocation3], 4294965248  ;;  %vm47_vm0 = vcmask 1043456   ;;  %vm43_vm1 = vcmask 31744   ;;  %v38_v0 = vld [vmem:[%s243_s1] sm:$0xf] }
   0x7   :  { %v37_v1 = vld [vmem:[%s242_s0] sm:$0xff]  ;;  %v87_v2 = vld [vmem:[#allocation2 + $0x78] sm:$0xff]  ;;  %130 = vmatpush.msk.msra.mxu0 %vm47_vm0, %v38_v0  ;;  %v86_v3 = vld [vmem:[#allocation2 + $0x70] sm:$0xff]  ;;  %s193_s30 = smov [#allocation5]   ;;  %s120_s9 = sshll.u32 %s247_s5, 4  ;;  %s121_s9 = int_to_ptr.hbm [resolvable:$true] %s120_s9 }
   0x8   :  { %92 = vmatpush.msra.mxu1 %v87_v2  ;;  %131 = vmatmul.msk.f32.vlgmr.msra.gmra.mxu0 %vm43_vm1, %v37_v1  ;;  %v85_v4 = vld [vmem:[#allocation2 + $0x68] sm:$0xff]  ;;  %v84_v5 = vld [vmem:[#allocation2 + $0x60] sm:$0xff]  ;;  %v83_v6 = vld [vmem:[#allocation2 + $0x58] sm:$0xff]  ;;  %s118_s6 = sshll.u32 %s193_s30, 4  ;;  %s119_s6 = int_to_ptr.vmem [resolvable:$true] %s118_s6 }
   0x9   :  { %v82_v7 = vld [vmem:[#allocation2 + $0x50] sm:$0xff]  ;;  %v81_v8 = vld [vmem:[#allocation2 + $0x48] sm:$0xff]  ;;  %v80_v9 = vld [vmem:[#allocation2 + $0x40] sm:$0xff] }
   0xa   :  { %93 = vmatpush.msra.mxu1 %v86_v3  ;;  %v79_v10 = vld [vmem:[#allocation2 + $0x38] sm:$0xff]  ;;  %v78_v11 = vld [vmem:[#allocation2 + $0x30] sm:$0xff]  ;;  %v77_v12 = vld [vmem:[#allocation2 + $0x28] sm:$0xff] }
   0xb   :  { %v76_v13 = vld [vmem:[#allocation2 + $0x20] sm:$0xff]  ;;  %v75_v14 = vld [vmem:[#allocation2 + $0x18] sm:$0xff]  ;;  %v74_v15 = vld [vmem:[#allocation2 + $0x10] sm:$0xff] }
   0xc   :  { %94 = vmatpush.msra.mxu1 %v85_v4  ;;  %v73_v16 = vld [vmem:[#allocation2 + $0x8] sm:$0xff]  ;;  %v72_v17 = vld [vmem:[#allocation2] sm:$0xff] }
   0xd   :  { %v136_v18 = vld [vmem:[%s244_s2] ss:$0 sm:$0xff] }
   0xe   :  { %95 = vmatpush.msra.mxu1 %v84_v5  ;;  %v137_v22 = vld [vmem:[%s246_s4] ss:$0 sm:$0xff] }
  0x10   :  { %96 = vmatpush.msra.mxu1 %v83_v6 }
  0x12   :  { %97 = vmatpush.msra.mxu1 %v82_v7 }
  0x14   :  { %98 = vmatpush.msra.mxu1 %v81_v8 }
  0x16   :  { %99 = vmatpush.msra.mxu1 %v80_v9 }
  0x18   :  { %100 = vmatpush.msra.mxu1 %v79_v10 }
  0x1a   :  { %101 = vmatpush.msra.mxu1 %v78_v11 }
  0x1c   :  { %102 = vmatpush.msra.mxu1 %v77_v12 }
  0x1e   :  { %103 = vmatpush.msra.mxu1 %v76_v13 }
  0x20   :  { %104 = vmatpush.msra.mxu1 %v75_v14 }
  0x22   :  { %105 = vmatpush.msra.mxu1 %v74_v15 }
  0x24   :  { %106 = vmatpush.msra.mxu1 %v73_v16 }
  0x26   :  { %107 = vmatpush.msra.mxu1 %v72_v17 }
  0x85   :  { %v68_v19 = vpop.f32.mrf.mxu0 }
  0x86   :  { %v69_v20 = vadd.f32 %v136_v18, %v68_v19 }
  0x88   :  { %v71_v21 = vmax.f32 %v69_v20, 0.0 }
  0x8a   :  { %108 = vmatmul.f32.vlgmr.msra.gmra.mxu1 %v71_v21 }
 0x107   :  { %v109_v23 = vpop.f32.mrf.mxu1 }
 0x108   :  { %v110_v24 = vadd.f32 %v137_v22, %v109_v23 }
 0x10a   :  { %112 = vst [vmem:[#allocation5] sm:$0xff] %v110_v24 }
 0x10b   :  { %123 = dma.vmem_to_hbm [thread:$0]  %s119_s6, 128, %s121_s9, [#allocation4]  }
 0x10c   :  { %188 = dma.done.wait [#allocation4], 128  }
 0x10d   :  { %189 = vsyncadd [#allocation4], 4294967168 }
 0x10e   :  { %128 = vsyncpa [#allocation3], 1 }
 0x10f   :  { %129 = vsyncpa [#allocation4], 1 }

</bundles_post_ra>
